<compile_context>
chip_gen: v7x
topology: tpu7x:2x2x1
jax: 0.10.0
libtpu: 0.0.40
codegen_flags: <defaults>
</compile_context>

<pallas_src>
import jax
import jax.numpy as jnp
from jax.experimental import pallas as pl
from jax.experimental.pallas import tpu as pltpu

_LANE = 128
_SUBLANE = 8


def _round_up(n, m):
    return ((n + m - 1) // m) * m


def _mlp_kernel(x_ref, w1_ref, b1_ref, w2_ref, b2_ref, w3_ref, b3_ref,
                w4_ref, b4_ref, o_ref):
    """4-layer MLP (3x Linear+ReLU, 1x Linear) on one (TM, d_in) batch tile.

    x arrives in f32 and is cast to bf16 on-chip (saves an HBM round trip in
    the wrapper); every matmul accumulates in f32 on the MXU; bias add + ReLU
    run in f32 on the VPU; hidden activations are cast back to bf16 so layers
    2-4 also run as bf16 MXU passes.
    """
    x = x_ref[...].astype(w1_ref.dtype)   # f32 -> bf16, per tile, on the VPU
    h = jnp.dot(x, w1_ref[...],
                preferred_element_type=jnp.float32) + b1_ref[...]
    h = jnp.maximum(h, 0.0).astype(w2_ref.dtype)

    h = jnp.dot(h, w2_ref[...],
                preferred_element_type=jnp.float32) + b2_ref[...]
    h = jnp.maximum(h, 0.0).astype(w3_ref.dtype)

    h = jnp.dot(h, w3_ref[...],
                preferred_element_type=jnp.float32) + b3_ref[...]
    h = jnp.maximum(h, 0.0).astype(w4_ref.dtype)

    out = jnp.dot(h, w4_ref[...],
                  preferred_element_type=jnp.float32) + b4_ref[...]
    o_ref[...] = out.astype(o_ref.dtype)


def prepare_params(params, compute_dtype=jnp.bfloat16):
    """One-time conversion of f32 module params for the kernel (hoisted out of
    the per-forward path so the bf16 copies are not re-written to HBM per call).

    * weights -> bf16 (MXU input dtype)
    * biases -> (1, fan_out) f32 (accepts 1-D PyTorch-exported biases)
    * final layer padded to a lane-dense 128-wide output
    """
    num_classes = params["w4"].shape[1]
    n_out = _round_up(max(num_classes, _LANE), _LANE)

    def bias2d(name):
        return params[name].astype(jnp.float32).reshape(1, -1)

    prep = {
        "w1": params["w1"].astype(compute_dtype),
        "w2": params["w2"].astype(compute_dtype),
        "w3": params["w3"].astype(compute_dtype),
        "w4": jnp.pad(params["w4"],
                      ((0, 0), (0, n_out - num_classes))).astype(compute_dtype),
        "b1": bias2d("b1"),
        "b2": bias2d("b2"),
        "b3": bias2d("b3"),
        "b4": jnp.pad(bias2d("b4"), ((0, 0), (0, n_out - num_classes))),
        "num_classes": num_classes,   # plain int (do not jit over this dict)
    }
    return prep


def _device_config():
    """Tiling / buffering per TPU generation.

    Returns (block_m, vmem_limit_bytes, single_buffer_weights, force_two_tiles).
    """
    try:
        vmem = int(pltpu.get_tpu_info().vmem_capacity_bytes)
    except Exception:
        vmem = None
    if vmem is not None and vmem >= (100 << 20):
        # v5e / v6e: 128 MiB VMEM, 1 TensorCore. f32 x tile @512 rows (64x64
        # images) = 24 MiB x 2 buffers + ~6.5 MiB weights + output ~= 55 MiB.
        return 512, 80 << 20, False, False
    if vmem is not None:
        # v7x: 64 MiB VMEM per TC, 2 TCs/chip. Keep the tile modest,
        # single-buffer the resident weights, give both cores a grid tile.
        return 256, 48 << 20, True, True
    # Unknown device: previous known-good conservative config.
    return 256, 32 << 20, False, False


def mlp_classifier_deep_forward(x, prep, *, block_m=None):
    """x: (b, 3, H, W) float32; prep: output of prepare_params.

    Returns (b, num_classes) float32 logits: same forward as the PyTorch
    module (x.view(b, -1) -> 3x Linear+ReLU -> Linear), computed in bf16 on
    the MXU with f32 accumulation (matches f32 to bf16-level tolerance).
    """
    b = x.shape[0]
    d_in = x.shape[1] * x.shape[2] * x.shape[3]
    num_classes = prep["num_classes"]
    n_out = prep["w4"].shape[1]

    # Row-major flatten == torch .view(b, -1); stays f32 (no extra HBM pass).
    x_flat = x.reshape(b, d_in)

    auto_block_m, vmem_limit, single_buf_w, force_two_tiles = _device_config()
    if block_m is None:
        block_m = auto_block_m

    # Batch tile: big enough to amortize per-step pipeline overhead, small
    # enough that (f32 x tile * 2 buffers + resident weights) fits the budget.
    tm = min(block_m, _round_up(b, _SUBLANE))
    if force_two_tiles and b > _SUBLANE:
        # Multi-TensorCore chips: ensure >= 2 tiles so the "parallel" batch
        # axis actually shards across both cores.
        tm = min(tm, _round_up(pl.cdiv(b, 2), _SUBLANE))
    num_tiles = pl.cdiv(b, tm)
    b_out = num_tiles * tm

    x_spec = pl.BlockSpec((tm, d_in), lambda i: (i, 0))
    out_spec = pl.BlockSpec((tm, n_out), lambda i: (i, 0))

    # Weights/biases use constant index maps -> fetched once, VMEM-resident
    # across grid steps. On small-VMEM chips single-buffer them: a constant
    # block never re-DMAs, so the second pipeline buffer is pure VMEM waste.
    if single_buf_w and hasattr(pl, "Buffered"):
        def resident(shape):
            return pl.BlockSpec(shape, lambda i: (0, 0),
                                pipeline_mode=pl.Buffered(1))
    else:
        def resident(shape):
            return pl.BlockSpec(shape, lambda i: (0, 0))

    hid = prep["w1"].shape[1]
    flops = 2 * b_out * (d_in * hid + 2 * hid * hid + hid * n_out)
    weight_keys = ("w1", "b1", "w2", "b2", "w3", "b3", "w4", "b4")
    bytes_accessed = (
        b_out * d_in * x_flat.dtype.itemsize
        + sum(int(prep[k].size) * prep[k].dtype.itemsize for k in weight_keys)
        + b_out * n_out * 4)

    out = pl.pallas_call(
        _mlp_kernel,
        out_shape=jax.ShapeDtypeStruct((b_out, n_out), jnp.float32),
        grid=(num_tiles,),
        in_specs=[
            x_spec,
            resident(prep["w1"].shape), resident(prep["b1"].shape),
            resident(prep["w2"].shape), resident(prep["b2"].shape),
            resident(prep["w3"].shape), resident(prep["b3"].shape),
            resident(prep["w4"].shape), resident(prep["b4"].shape),
        ],
        out_specs=out_spec,
        compiler_params=pltpu.CompilerParams(
            dimension_semantics=("parallel",),
            vmem_limit_bytes=vmem_limit,
        ),
        cost_estimate=pl.CostEstimate(
            flops=int(flops), transcendentals=0,
            bytes_accessed=int(bytes_accessed)),
    )(x_flat, prep["w1"], prep["b1"], prep["w2"], prep["b2"],
      prep["w3"], prep["b3"], prep["w4"], prep["b4"])

    # NOTE: the ragged last x tile may read past the end of x (unspecified
    # data). That garbage stays row-local in `out` and is sliced off here;
    # never reduce over the padded rows.
    return out[:b, :num_classes]


def init_params(key, h, w, num_classes, hidden_sizes=(128, 128, 128)):
    """Deterministic init mimicking nn.Linear's U(-1/sqrt(fan_in), 1/sqrt(fan_in)).

    Biases are 1-D (fan_out,) like a real PyTorch export; prepare_params
    reshapes them for the kernel.
    """
    dims = [3 * h * w, *hidden_sizes, num_classes]
    params = {}
    for i in range(len(dims) - 1):
        fan_in, fan_out = dims[i], dims[i + 1]
        key, kw, kb = jax.random.split(key, 3)
        bound = 1.0 / jnp.sqrt(fan_in)
        params[f"w{i+1}"] = jax.random.uniform(
            kw, (fan_in, fan_out), jnp.float32, -bound, bound)
        params[f"b{i+1}"] = jax.random.uniform(
            kb, (fan_out,), jnp.float32, -bound, bound)
    return params


def reference_forward(x, params, compute_dtype=jnp.bfloat16):
    """Pure-JAX reference with the same dtype recipe as the kernel."""
    b = x.shape[0]
    h = x.reshape(b, -1).astype(compute_dtype)
    for i in (1, 2, 3):
        w = params[f"w{i}"].astype(compute_dtype)
        h = jnp.dot(h, w, preferred_element_type=jnp.float32) + params[f"b{i}"]
        h = jnp.maximum(h, 0.0).astype(compute_dtype)
    w4 = params["w4"].astype(compute_dtype)
    return jnp.dot(h, w4, preferred_element_type=jnp.float32) + params["b4"]


if __name__ == "__main__":
    # Small-shape config consistent with the module: 3-channel 16x16 image,
    # batch 2, 6 classes. (Module default is 64x64; logic is identical.)
    B, C, H, W, NUM_CLASSES = 2, 3, 16, 16, 6

    key = jax.random.PRNGKey(0)
    key, kx = jax.random.split(key)
    x = jax.random.normal(kx, (B, C, H, W), dtype=jnp.float32)

    params = init_params(key, H, W, NUM_CLASSES)
    prep = prepare_params(params)           # one-time weight conversion

    logits = jax.block_until_ready(mlp_classifier_deep_forward(x, prep))

    ref_bf16 = reference_forward(x, params, compute_dtype=jnp.bfloat16)
    ref_f32 = reference_forward(x, params, compute_dtype=jnp.float32)

    assert logits.shape == (B, NUM_CLASSES), logits.shape
    assert jnp.allclose(logits, ref_bf16, atol=2e-3, rtol=2e-3), (
        f"bf16-ref max abs err {jnp.max(jnp.abs(logits - ref_bf16))}")
    assert jnp.allclose(logits, ref_f32, atol=5e-2, rtol=5e-2), (
        f"f32-ref max abs err {jnp.max(jnp.abs(logits - ref_f32))}")

    print("KERNEL_OK")
</pallas_src>

<mosaic_0001>
module attributes {stable_mosaic.version = 11 : i64} {
  func.func @_mlp_kernel(%arg0: i32, %arg1: memref<8x768xf32, #tpu.memory_space<vmem>>, %arg2: memref<768x128xbf16, #tpu.memory_space<vmem>>, %arg3: memref<1x128xf32, #tpu.memory_space<vmem>>, %arg4: memref<128x128xbf16, #tpu.memory_space<vmem>>, %arg5: memref<1x128xf32, #tpu.memory_space<vmem>>, %arg6: memref<128x128xbf16, #tpu.memory_space<vmem>>, %arg7: memref<1x128xf32, #tpu.memory_space<vmem>>, %arg8: memref<128x128xbf16, #tpu.memory_space<vmem>>, %arg9: memref<1x128xf32, #tpu.memory_space<vmem>>, %arg10: memref<8x128xf32, #tpu.memory_space<vmem>>) attributes {dimension_semantics = [#tpu.dimension_semantics<parallel>], iteration_bounds = array<i64: 1>, scalar_prefetch = 0 : i64, scratch_operands = 0 : i64, tpu.core_type = #tpu.core_type<tc>, window_params = [{transform_indices = @transform_0, window_bounds = array<i64: 8, 768>}, {pipeline_mode = #tpu.pipeline_mode<synchronous>, transform_indices = @transform_1, window_bounds = array<i64: 768, 128>}, {pipeline_mode = #tpu.pipeline_mode<synchronous>, transform_indices = @transform_2, window_bounds = array<i64: 1, 128>}, {pipeline_mode = #tpu.pipeline_mode<synchronous>, transform_indices = @transform_3, window_bounds = array<i64: 128, 128>}, {pipeline_mode = #tpu.pipeline_mode<synchronous>, transform_indices = @transform_4, window_bounds = array<i64: 1, 128>}, {pipeline_mode = #tpu.pipeline_mode<synchronous>, transform_indices = @transform_5, window_bounds = array<i64: 128, 128>}, {pipeline_mode = #tpu.pipeline_mode<synchronous>, transform_indices = @transform_6, window_bounds = array<i64: 1, 128>}, {pipeline_mode = #tpu.pipeline_mode<synchronous>, transform_indices = @transform_7, window_bounds = array<i64: 128, 128>}, {pipeline_mode = #tpu.pipeline_mode<synchronous>, transform_indices = @transform_8, window_bounds = array<i64: 1, 128>}, {transform_indices = @transform_9, window_bounds = array<i64: 8, 128>}]} {
    %c0 = arith.constant 0 : index
    %c0_0 = arith.constant 0 : index
    %0 = vector.load %arg1[%c0, %c0_0] : memref<8x768xf32, #tpu.memory_space<vmem>>, vector<8x768xf32>
    %1 = arith.truncf %0 : vector<8x768xf32> to vector<8x768xbf16>
    %c0_1 = arith.constant 0 : index
    %c0_2 = arith.constant 0 : index
    %2 = vector.load %arg2[%c0_1, %c0_2] : memref<768x128xbf16, #tpu.memory_space<vmem>>, vector<768x128xbf16>
    %cst = arith.constant dense<0.000000e+00> : vector<8x128xf32>
    %3 = tpu.matmul %1, %2, %cst {dimension_numbers = #tpu.dot_dimension_numbers<[1], [0], [0], [1], [0, 0, 1, 1], [], []>} : vector<8x768xbf16>, vector<768x128xbf16>, vector<8x128xf32> -> vector<8x128xf32>
    %c0_3 = arith.constant 0 : index
    %c0_4 = arith.constant 0 : index
    %4 = vector.load %arg3[%c0_3, %c0_4] : memref<1x128xf32, #tpu.memory_space<vmem>>, vector<1x128xf32>
    %5 = vector.broadcast %4 : vector<1x128xf32> to vector<8x128xf32>
    %6 = arith.addf %3, %5 : vector<8x128xf32>
    %cst_5 = arith.constant 0.000000e+00 : f32
    %7 = vector.broadcast %cst_5 : f32 to vector<8x128xf32>
    %8 = arith.maximumf %6, %7 : vector<8x128xf32>
    %9 = arith.truncf %8 : vector<8x128xf32> to vector<8x128xbf16>
    %c0_6 = arith.constant 0 : index
    %c0_7 = arith.constant 0 : index
    %10 = vector.load %arg4[%c0_6, %c0_7] : memref<128x128xbf16, #tpu.memory_space<vmem>>, vector<128x128xbf16>
    %cst_8 = arith.constant dense<0.000000e+00> : vector<8x128xf32>
    %11 = tpu.matmul %9, %10, %cst_8 {dimension_numbers = #tpu.dot_dimension_numbers<[1], [0], [0], [1], [0, 0, 1, 1], [], []>} : vector<8x128xbf16>, vector<128x128xbf16>, vector<8x128xf32> -> vector<8x128xf32>
    %c0_9 = arith.constant 0 : index
    %c0_10 = arith.constant 0 : index
    %12 = vector.load %arg5[%c0_9, %c0_10] : memref<1x128xf32, #tpu.memory_space<vmem>>, vector<1x128xf32>
    %13 = vector.broadcast %12 : vector<1x128xf32> to vector<8x128xf32>
    %14 = arith.addf %11, %13 : vector<8x128xf32>
    %cst_11 = arith.constant 0.000000e+00 : f32
    %15 = vector.broadcast %cst_11 : f32 to vector<8x128xf32>
    %16 = arith.maximumf %14, %15 : vector<8x128xf32>
    %17 = arith.truncf %16 : vector<8x128xf32> to vector<8x128xbf16>
    %c0_12 = arith.constant 0 : index
    %c0_13 = arith.constant 0 : index
    %18 = vector.load %arg6[%c0_12, %c0_13] : memref<128x128xbf16, #tpu.memory_space<vmem>>, vector<128x128xbf16>
    %cst_14 = arith.constant dense<0.000000e+00> : vector<8x128xf32>
    %19 = tpu.matmul %17, %18, %cst_14 {dimension_numbers = #tpu.dot_dimension_numbers<[1], [0], [0], [1], [0, 0, 1, 1], [], []>} : vector<8x128xbf16>, vector<128x128xbf16>, vector<8x128xf32> -> vector<8x128xf32>
    %c0_15 = arith.constant 0 : index
    %c0_16 = arith.constant 0 : index
    %20 = vector.load %arg7[%c0_15, %c0_16] : memref<1x128xf32, #tpu.memory_space<vmem>>, vector<1x128xf32>
    %21 = vector.broadcast %20 : vector<1x128xf32> to vector<8x128xf32>
    %22 = arith.addf %19, %21 : vector<8x128xf32>
    %cst_17 = arith.constant 0.000000e+00 : f32
    %23 = vector.broadcast %cst_17 : f32 to vector<8x128xf32>
    %24 = arith.maximumf %22, %23 : vector<8x128xf32>
    %25 = arith.truncf %24 : vector<8x128xf32> to vector<8x128xbf16>
    %c0_18 = arith.constant 0 : index
    %c0_19 = arith.constant 0 : index
    %26 = vector.load %arg8[%c0_18, %c0_19] : memref<128x128xbf16, #tpu.memory_space<vmem>>, vector<128x128xbf16>
    %cst_20 = arith.constant dense<0.000000e+00> : vector<8x128xf32>
    %27 = tpu.matmul %25, %26, %cst_20 {dimension_numbers = #tpu.dot_dimension_numbers<[1], [0], [0], [1], [0, 0, 1, 1], [], []>} : vector<8x128xbf16>, vector<128x128xbf16>, vector<8x128xf32> -> vector<8x128xf32>
    %c0_21 = arith.constant 0 : index
    %c0_22 = arith.constant 0 : index
    %28 = vector.load %arg9[%c0_21, %c0_22] : memref<1x128xf32, #tpu.memory_space<vmem>>, vector<1x128xf32>
    %29 = vector.broadcast %28 : vector<1x128xf32> to vector<8x128xf32>
    %30 = arith.addf %27, %29 : vector<8x128xf32>
    %c0_23 = arith.constant 0 : index
    %c0_24 = arith.constant 0 : index
    %31 = vector.load %arg10[%c0_23, %c0_24] : memref<8x128xf32, #tpu.memory_space<vmem>>, vector<8x128xf32>
    tpu.vector_store %arg10[%c0_23, %c0_24], %30 {strides = array<i32>} : memref<8x128xf32, #tpu.memory_space<vmem>>, vector<8x128xf32>,
    return
  }
  func.func @transform_0(%arg0: i32) -> (i32, i32) {
    %c0_i32 = arith.constant 0 : i32
    %c0_i32_0 = arith.constant 0 : i32
    return %arg0, %c0_i32 : i32, i32
  }
  func.func @transform_1(%arg0: i32) -> (i32, i32) {
    %c0_i32 = arith.constant 0 : i32
    %c0_i32_0 = arith.constant 0 : i32
    %c0_i32_1 = arith.constant 0 : i32
    return %c0_i32, %c0_i32_0 : i32, i32
  }
  func.func @transform_2(%arg0: i32) -> (i32, i32) {
    %c0_i32 = arith.constant 0 : i32
    %c0_i32_0 = arith.constant 0 : i32
    %c0_i32_1 = arith.constant 0 : i32
    return %c0_i32, %c0_i32_0 : i32, i32
  }
  func.func @transform_3(%arg0: i32) -> (i32, i32) {
    %c0_i32 = arith.constant 0 : i32
    %c0_i32_0 = arith.constant 0 : i32
    %c0_i32_1 = arith.constant 0 : i32
    return %c0_i32, %c0_i32_0 : i32, i32
  }
  func.func @transform_4(%arg0: i32) -> (i32, i32) {
    %c0_i32 = arith.constant 0 : i32
    %c0_i32_0 = arith.constant 0 : i32
    %c0_i32_1 = arith.constant 0 : i32
    return %c0_i32, %c0_i32_0 : i32, i32
  }
  func.func @transform_5(%arg0: i32) -> (i32, i32) {
    %c0_i32 = arith.constant 0 : i32
    %c0_i32_0 = arith.constant 0 : i32
    %c0_i32_1 = arith.constant 0 : i32
    return %c0_i32, %c0_i32_0 : i32, i32
  }
  func.func @transform_6(%arg0: i32) -> (i32, i32) {
    %c0_i32 = arith.constant 0 : i32
    %c0_i32_0 = arith.constant 0 : i32
    %c0_i32_1 = arith.constant 0 : i32
    return %c0_i32, %c0_i32_0 : i32, i32
  }
  func.func @transform_7(%arg0: i32) -> (i32, i32) {
    %c0_i32 = arith.constant 0 : i32
    %c0_i32_0 = arith.constant 0 : i32
    %c0_i32_1 = arith.constant 0 : i32
    return %c0_i32, %c0_i32_0 : i32, i32
  }
  func.func @transform_8(%arg0: i32) -> (i32, i32) {
    %c0_i32 = arith.constant 0 : i32
    %c0_i32_0 = arith.constant 0 : i32
    %c0_i32_1 = arith.constant 0 : i32
    return %c0_i32, %c0_i32_0 : i32, i32
  }
  func.func @transform_9(%arg0: i32) -> (i32, i32) {
    %c0_i32 = arith.constant 0 : i32
    %c0_i32_0 = arith.constant 0 : i32
    return %arg0, %c0_i32 : i32, i32
  }
}

</mosaic_0001>

<bundles_post_ra>
// kernel: tpu_custom_call.1
= control target key start
LH: loop header
LB: loop body
LE: loop exit
PB: predicated region body
PF: predicated region fallthrough
CT: control target
= control target key end

     0   :  { %14 = vsyncpa [#allocation3], 0  ;;  %s1703_s0 = inlined_call_operand.hbm [shape: f32[2,768], index: 0, kind: input, shape index: {}]   ;;  %s1704_s1 = inlined_call_operand.hbm [shape: bf16[768,128], index: 1, kind: input, shape index: {}]   ;;  %s1705_s2 = inlined_call_operand.vmem [shape: f32[1,128], index: 2, kind: input, shape index: {}]   ;;  %s1706_s3 = inlined_call_operand.hbm [shape: bf16[128,128], index: 3, kind: input, shape index: {}]   ;;  %s1707_s4 = inlined_call_operand.vmem [shape: f32[1,128], index: 4, kind: input, shape index: {}]   ;;  %s1708_s5 = inlined_call_operand.hbm [shape: bf16[128,128], index: 5, kind: input, shape index: {}]   ;;  %s1709_s6 = inlined_call_operand.vmem [shape: f32[1,128], index: 6, kind: input, shape index: {}]   ;;  %s1710_s7 = inlined_call_operand.hbm [shape: bf16[128,128], index: 7, kind: input, shape index: {}]   ;;  %s1711_s8 = inlined_call_operand.vmem [shape: f32[1,128], index: 8, kind: input, shape index: {}]   ;;  %s1712_s9 = inlined_call_operand.hbm [shape: f32[8,128], index: 9, kind: output, shape index: {}]  }
   0x1   :  { %15 = vsyncpa [#allocation6], 0 }
   0x2   :  { %16 = vsyncpa [#allocation9], 0 }
   0x3   :  { %17 = vsyncpa [#allocation4], 0 }
   0x4   :  { %22 = vsyncadd [#allocation3], 576  ;;  %s1514_s30 = smov [#allocation5]   ;;  %s1374_s13 = scalar_lea.hbm %s1704_s1, 6144 }
   0x5   :  { %s35_s10 = sshll.u32 %s1514_s30, 4  ;;  %p1375_p0 = scmp.ne.s32.totalorder %s1704_s1, %s1374_s13  ;;  %s36_s10 = int_to_ptr.vmem [resolvable:$true] %s35_s10 }
   0x6   :  { %p1378_p1 = scmp.lt.u32.totalorder %s1374_s13, %s1704_s1 }
   0x8   :  { %p1380_p2 = pnand %p1378_p1, %p1375_p0 }
   0xa   :  { %1383 = shalt.err (!%p1380_p2)
}
   0xb   :  { %s1384_s18 = scalar_lea.vmem %s36_s10, 6144  ;;  %p1389_p4 = scmp.lt.s32.totalorder %s36_s10, %s36_s10 }
   0xc   :  { %p1385_p3 = scmp.ne.s32.totalorder %s36_s10, %s1384_s18  ;;  %p1390_p5 = scmp.lt.s32.totalorder %s1384_s18, %s1384_s18 }
   0xe   :  { %p1391_p6 = por %p1390_p5, %p1389_p4 }
  0x10   :  { %p1392_p7 = pnand %p1391_p6, %p1385_p3 }
  0x12   :  { %1395 = shalt.err (!%p1392_p7)
}
  0x13   :  { %s1515_s19 = smov 64   ;;  %s1516_s20 = smov 4  }
  0x14   :  { %41 = dma.hbm_to_vmem [thread:$0]  %s1704_s1, 6144, %s36_s10, [#allocation6], %s1515_s19, %s1515_s19, %s1516_s20  }
  0x15   :  { %s1517_s23 = smov [#allocation8]   ;;  %s1518_s25 = smov [#allocation2]  }
  0x16   :  { %s63_s24 = sshll.u32 %s1517_s23, 4  ;;  %s23_s26 = sshll.u32 %s1518_s25, 4  ;;  %s64_s24 = int_to_ptr.vmem [resolvable:$true] %s63_s24  ;;  %s24_s26 = int_to_ptr.vmem [resolvable:$true] %s23_s26 }
  0x17   :  { %s1396_s29 = scalar_lea.hbm %s1708_s5, 1024 }
  0x18   :  { %p1397_p8 = scmp.ne.s32.totalorder %s1708_s5, %s1396_s29  ;;  %p1400_p9 = scmp.lt.u32.totalorder %s1396_s29, %s1708_s5 }
  0x1a   :  { %p1402_p10 = pnand %p1400_p9, %p1397_p8 }
  0x1c   :  { %1405 = shalt.err (!%p1402_p10)
}
  0x1d   :  { %s1406_s1 = scalar_lea.vmem %s64_s24, 1024  ;;  %p1411_p12 = scmp.lt.s32.totalorder %s64_s24, %s64_s24 }
  0x1e   :  { %p1407_p11 = scmp.ne.s32.totalorder %s64_s24, %s1406_s1  ;;  %p1412_p13 = scmp.lt.s32.totalorder %s1406_s1, %s1406_s1 }
  0x20   :  { %p1413_p0 = por %p1412_p13, %p1411_p12 }
  0x22   :  { %p1414_p1 = pnand %p1413_p0, %p1407_p11 }
  0x24   :  { %1417 = shalt.err (!%p1414_p1)
}
  0x25   :  { %69 = dma.hbm_to_vmem [thread:$0]  %s1708_s5, 1024, %s64_s24, [#allocation9], %s1515_s19, %s1515_s19, %s1516_s20  }
  0x26   :  { %s1418_s17 = scalar_lea.hbm %s1703_s0, 192 }
  0x27   :  { %p1419_p2 = scmp.ne.s32.totalorder %s1703_s0, %s1418_s17  ;;  %p1422_p3 = scmp.lt.u32.totalorder %s1418_s17, %s1703_s0 }
  0x29   :  { %p1424_p4 = pnand %p1422_p3, %p1419_p2 }
  0x2b   :  { %1427 = shalt.err (!%p1424_p4)
}
  0x2c   :  { %s1428_s25 = scalar_lea.vmem %s24_s26, 192  ;;  %s1432_s27 = scalar_lea.vmem %s24_s26, 768 }
  0x2d   :  { %p1429_p5 = scmp.ne.s32.totalorder %s24_s26, %s1428_s25  ;;  %p1433_p6 = scmp.lt.s32.totalorder %s24_s26, %s24_s26 }
  0x2e   :  { %p1434_p7 = scmp.lt.s32.totalorder %s1432_s27, %s1428_s25 }
  0x30   :  { %p1435_p8 = por %p1434_p7, %p1433_p6 }
  0x32   :  { %p1436_p9 = pnand %p1435_p8, %p1429_p5 }
  0x34   :  { %1439 = shalt.err (!%p1436_p9)
}
  0x35   :  { %s1519_s5 = smov 192   ;;  %s1520_s24 = smov 12  }
  0x36   :  { %29 = dma.hbm_to_vmem [thread:$0]  %s1703_s0, 192, %s24_s26, [#allocation3], %s1519_s5, %s1519_s5, %s1520_s24  }
  0x37   :  { %s1521_s30 = smov [#allocation7]   ;;  %s1522_s12 = smov [#allocation10]  }
  0x38   :  { %s49_s11 = sshll.u32 %s1521_s30, 4  ;;  %s77_s13 = sshll.u32 %s1522_s12, 4  ;;  %s50_s11 = int_to_ptr.vmem [resolvable:$true] %s49_s11  ;;  %s78_s13 = int_to_ptr.vmem [resolvable:$true] %s77_s13 }
  0x39   :  { %s1440_s14 = scalar_lea.hbm %s1706_s3, 1024 }
  0x3a   :  { %p1441_p10 = scmp.ne.s32.totalorder %s1706_s3, %s1440_s14  ;;  %p1444_p11 = scmp.lt.u32.totalorder %s1440_s14, %s1706_s3 }
  0x3c   :  { %p1446_p12 = pnand %p1444_p11, %p1441_p10 }
  0x3e   :  { %1449 = shalt.err (!%p1446_p12)
}
  0x3f   :  { %s1450_s0 = scalar_lea.vmem %s50_s11, 1024  ;;  %p1455_p0 = scmp.lt.s32.totalorder %s50_s11, %s50_s11 }
  0x40   :  { %p1451_p13 = scmp.ne.s32.totalorder %s50_s11, %s1450_s0  ;;  %p1456_p1 = scmp.lt.s32.totalorder %s1450_s0, %s1450_s0 }
  0x42   :  { %p1457_p2 = por %p1456_p1, %p1455_p0 }
  0x44   :  { %p1458_p3 = pnand %p1457_p2, %p1451_p13 }
  0x46   :  { %1461 = shalt.err (!%p1458_p3)
}
  0x47   :  { %55 = dma.hbm_to_vmem [thread:$0]  %s1706_s3, 1024, %s50_s11, [#allocation6], %s1515_s19, %s1515_s19, %s1516_s20  }
  0x48   :  { %s1462_s25 = scalar_lea.hbm %s1710_s7, 1024 }
  0x49   :  { %p1463_p4 = scmp.ne.s32.totalorder %s1710_s7, %s1462_s25  ;;  %p1466_p5 = scmp.lt.u32.totalorder %s1462_s25, %s1710_s7 }
  0x4b   :  { %p1468_p6 = pnand %p1466_p5, %p1463_p4 }
  0x4d   :  { %1471 = shalt.err (!%p1468_p6)
}
  0x4e   :  { %s1472_s29 = scalar_lea.vmem %s78_s13, 1024  ;;  %p1477_p8 = scmp.lt.s32.totalorder %s78_s13, %s78_s13 }
  0x4f   :  { %p1473_p7 = scmp.ne.s32.totalorder %s78_s13, %s1472_s29  ;;  %p1478_p9 = scmp.lt.s32.totalorder %s1472_s29, %s1472_s29 }
  0x51   :  { %p1479_p10 = por %p1478_p9, %p1477_p8 }
  0x53   :  { %p1480_p11 = pnand %p1479_p10, %p1473_p7 }
  0x55   :  { %1483 = shalt.err (!%p1480_p11)
}
  0x56   :  { %83 = dma.hbm_to_vmem [thread:$0]  %s1710_s7, 1024, %s78_s13, [#allocation9], %s1515_s19, %s1515_s19, %s1516_s20  }
  0x57   :  { %1506 = dma.done.wait [#allocation3], 768  }
  0x58   :  { %1507 = vsyncadd [#allocation3], 4294966528 }
  0x59   :  { %1508 = dma.done.wait [#allocation6], 7168  }
  0x5a   :  { %1509 = vsyncadd [#allocation6], 4294960128 }
  0x5b   :  { %1510 = dma.done.wait [#allocation9], 2048  }
  0x5c   :  { %1511 = vsyncadd [#allocation9], 4294965248  ;;  %v1294_v0 = vld [vmem:[#allocation5 + $0x40] sm:$0xff]   ;;  %v1298_v4 = vld [vmem:[#allocation5 + $0x48] sm:$0xff]   ;;  %v1523_v23 = vmov 1983009808   ;;  %v125_v25 = vlaneseq }
  0x5d   :  { %v1295_v1 = vld [vmem:[#allocation5] sm:$0xff]   ;;  %1128 = vmatprep.subr.bf16.mxu0 %v1294_v0  ;;  %v1299_v5 = vld [vmem:[#allocation5 + $0x8] sm:$0xff]   ;;  %v1302_v8 = vld [vmem:[#allocation5 + $0x50] sm:$0xff]   ;;  %v123_v24 = vunpack.c.l.s4 %v1523_v23  ;;  %vm1525_vm0 = vmmov 0   ;;  %s1526_s1 = smov [#allocation11]  }
  0x5e   :  { %v1296_v2 = vld [vmem:[#allocation5 + $0xc0] sm:$0xff]   ;;  %1129 = vmatpush3.bf16.msra.mxu0 %v1295_v1  ;;  %v1300_v6 = vld [vmem:[#allocation5 + $0xc8] sm:$0xff]   ;;  %v1303_v9 = vld [vmem:[#allocation5 + $0x10] sm:$0xff]   ;;  %v126_v31 = vshrl.u32 %v125_v25, 7  ;;  %s1041_s10 = sshll.u32 %s1526_s1, 4  ;;  %s1042_s10 = int_to_ptr.vmem [resolvable:$true] %s1041_s10 }
  0x5f   :  { %v1297_v3 = vld [vmem:[#allocation5 + $0x80] sm:$0xff]   ;;  %1150 = vmatprep.subr.bf16.mxu1 %v1296_v2  ;;  %1130 = vmatprep.subr.bf16.mxu0 %v1298_v4  ;;  %v1301_v7 = vld [vmem:[#allocation5 + $0x88] sm:$0xff]   ;;  %v1304_v10 = vld [vmem:[#allocation5 + $0xd0] sm:$0xff]   ;;  %v124_v30 = vunpack.c.0.s8 %v123_v24  ;;  %p1489_p13 = scmp.lt.s32.totalorder %s1042_s10, %s1042_s10 }
  0x60   :  { %1151 = vmatpush3.bf16.msra.mxu1 %v1297_v3  ;;  %v1305_v11 = vld [vmem:[#allocation5 + $0x90] sm:$0xff]   ;;  %v1306_v12 = vld [vmem:[#allocation5 + $0x58] sm:$0xff]   ;;  %v1310_v16 = vld [vmem:[#allocation5 + $0x60] sm:$0xff]  }
  0x61   :  { %1152 = vmatprep.subr.bf16.mxu1 %v1300_v6  ;;  %v1307_v13 = vld [vmem:[#allocation5 + $0x18] sm:$0xff]   ;;  %v1311_v17 = vld [vmem:[#allocation5 + $0x20] sm:$0xff]   ;;  %v1314_v20 = vld [vmem:[#allocation5 + $0x68] sm:$0xff]   ;;  %v127_v36 = vsub.s32 %v124_v30, %v126_v31 }
  0x62   :  { %1131 = vmatpush3.bf16.msra.mxu0 %v1299_v5  ;;  %v1308_v14 = vld [vmem:[#allocation5 + $0xd8] sm:$0xff]   ;;  %v1312_v18 = vld [vmem:[#allocation5 + $0xe0] sm:$0xff]   ;;  %v1315_v21 = vld [vmem:[#allocation5 + $0x28] sm:$0xff]  }
  0x63   :  { %1132 = vmatprep.subr.bf16.mxu0 %v1302_v8  ;;  %v1309_v15 = vld [vmem:[#allocation5 + $0x98] sm:$0xff]   ;;  %v1313_v19 = vld [vmem:[#allocation5 + $0xa0] sm:$0xff]   ;;  %v1316_v22 = vld [vmem:[#allocation5 + $0xe8] sm:$0xff]  }
  0x64   :  { %1153 = vmatpush3.bf16.msra.mxu1 %v1301_v7  ;;  %v1317_v26 = vld [vmem:[#allocation5 + $0xa8] sm:$0xff]   ;;  %v1318_v27 = vld [vmem:[#allocation5 + $0x70] sm:$0xff]   ;;  %v1322_v33 = vld [vmem:[#allocation5 + $0x78] sm:$0xff]  }
  0x65   :  { %1154 = vmatprep.subr.bf16.mxu1 %v1304_v10  ;;  %v1319_v28 = vld [vmem:[#allocation5 + $0x30] sm:$0xff]   ;;  %v1323_v34 = vld [vmem:[#allocation5 + $0x38] sm:$0xff]   ;;  %v1330_v42 = vld [vmem:[#allocation5 + $0x140] sm:$0xff]  }
  0x66   :  { %1133 = vmatpush3.bf16.msra.mxu0 %v1303_v9  ;;  %v1320_v29 = vld [vmem:[#allocation5 + $0xf0] sm:$0xff]   ;;  %v1324_v35 = vld [vmem:[#allocation5 + $0xf8] sm:$0xff]   ;;  %v1333_v51 = vld [vmem:[#allocation5 + $0x100] sm:$0xff]  }
  0x67   :  { %1134 = vmatprep.subr.bf16.mxu0 %v1306_v12  ;;  %v1321_v32 = vld [vmem:[#allocation5 + $0xb0] sm:$0xff]   ;;  %v1329_v39 = vld [vmem:[#allocation5 + $0xb8] sm:$0xff]   ;;  %v1334_v54 = vld [vmem:[#allocation5 + $0x148] sm:$0xff]  }
  0x68   :  { %1155 = vmatpush3.bf16.msra.mxu1 %v1305_v11  ;;  %v1325_v37 = vld [vmem:[#allocation2] ss:$12 sps:$4 sm:$0xff]   ;;  %v1327_v38 = vld [vmem:[#allocation2 + $0x18] ss:$12 sps:$4 sm:$0xff]   ;;  %v1332_v44 = vld [vmem:[#allocation2 + $0x1c] ss:$12 sps:$4 sm:$0xff]  }
  0x69   :  { %1156 = vmatprep.subr.bf16.mxu1 %v1308_v14  ;;  %v128_v40 = vrot.slane %v1325_v37, %v127_v36  ;;  %v142_v41 = vrot.slane %v1327_v38, %v127_v36  ;;  %v1331_v43 = vld [vmem:[#allocation2 + $0x4] ss:$12 sps:$4 sm:$0xff]   ;;  %v149_v48 = vrot.slane %v1332_v44, %v127_v36  ;;  %v1335_v57 = vld [vmem:[#allocation5 + $0x108] sm:$0xff]   ;;  %v1338_v60 = vld [vmem:[#allocation5 + $0x158] sm:$0xff]  }
  0x6a   :  { %1135 = vmatpush3.bf16.msra.mxu0 %v1307_v13  ;;  %v135_v47 = vrot.slane %v1331_v43, %v127_v36  ;;  %v1336_v58 = vld [vmem:[#allocation5 + $0x150] sm:$0xff]   ;;  %v1339_v61 = vld [vmem:[#allocation5 + $0x118] sm:$0xff]   ;;  %v1340_v62 = vld [vmem:[#allocation5 + $0x160] sm:$0xff]  }
  0x6b   :  { %1136 = vmatprep.subr.bf16.mxu0 %v1310_v16  ;;  %v151_v45 = vcombine.high %v128_v40, %v142_v41  ;;  %v150_v46 = vcombine.low %v128_v40, %v142_v41  ;;  %v1337_v59 = vld [vmem:[#allocation5 + $0x110] sm:$0xff]   ;;  %v1341_v63 = vld [vmem:[#allocation5 + $0x120] sm:$0xff]   ;;  %v1342_v2 = vld [vmem:[#allocation5 + $0x168] sm:$0xff]  }
  0x6c   :  { %1157 = vmatpush3.bf16.msra.mxu1 %v1309_v15  ;;  %v153_v52 = vcombine.high %v135_v47, %v149_v48  ;;  %v152_v53 = vcombine.low %v135_v47, %v149_v48  ;;  %v1348_v0 = vld [vmem:[#allocation2 + $0x8] ss:$12 sps:$4 sm:$0xff]   ;;  %v1349_v1 = vld [vmem:[#allocation2 + $0x20] ss:$12 sps:$4 sm:$0xff]   ;;  %v1343_v5 = vld [vmem:[#allocation5 + $0x128] sm:$0xff]   ;;  %v1524_v15 = vmov 0.0  }
  0x6d   :  { %1158 = vmatprep.subr.bf16.mxu1 %v1312_v18  ;;  %v179_v49 = vpack.c.bf16 %v151_v45, %v151_v45  ;;  %v178_v50 = vpack.c.bf16 %v150_v46, %v150_v46  ;;  %v162_v3 = vrot.slane %v1348_v0, %v127_v36  ;;  %v169_v4 = vrot.slane %v1349_v1, %v127_v36  ;;  %v1344_v7 = vld [vmem:[#allocation5 + $0x170] sm:$0xff]   ;;  %v1346_v10 = vld [vmem:[#allocation5 + $0x178] sm:$0xff]   ;;  %v1350_v14 = vld [vmem:[#allocation7] sm:$0xff]  }
  0x6e   :  { %1137 = vmatpush3.bf16.msra.mxu0 %v1311_v17  ;;  %v181_v55 = vpack.c.bf16 %v153_v52, %v153_v52  ;;  %v180_v56 = vpack.c.bf16 %v152_v53, %v152_v53  ;;  %v1345_v9 = vld [vmem:[#allocation5 + $0x130] sm:$0xff]   ;;  %v1347_v11 = vld [vmem:[#allocation5 + $0x138] sm:$0xff]   ;;  %v1351_v16 = vld [vmem:[#allocation7 + $0x8] sm:$0xff]  }
  0x6f   :  { %1138 = vmatprep.subr.bf16.mxu0 %v1314_v20  ;;  %607 = vmatprep.mubr.bf16.mxu0 %v179_v49  ;;  %v171_v6 = vcombine.high %v162_v3, %v169_v4  ;;  %v170_v12 = vcombine.low %v162_v3, %v169_v4  ;;  %v1352_v17 = vld [vmem:[#allocation7 + $0x10] sm:$0xff]   ;;  %v1353_v18 = vld [vmem:[#allocation7 + $0x18] sm:$0xff]   ;;  %v1355_v20 = vld [vmem:[#allocation7 + $0x28] sm:$0xff]  }
  0x70   :  { %1159 = vmatpush3.bf16.msra.mxu1 %v1313_v19  ;;  %647 = vmatprep.mubr.bf16.mxu1 %v181_v55  ;;  %v1354_v19 = vld [vmem:[#allocation7 + $0x20] sm:$0xff]   ;;  %v1359_v24 = vld [vmem:[#allocation8 + $0x8] sm:$0xff]   ;;  %v1360_v25 = vld [vmem:[#allocation8 + $0x10] sm:$0xff]  }
  0x71   :  { %1160 = vmatprep.subr.bf16.mxu1 %v1316_v22  ;;  %v183_v8 = vpack.c.bf16 %v171_v6, %v171_v6  ;;  %v182_v13 = vpack.c.bf16 %v170_v12, %v170_v12  ;;  %v1357_v22 = vld [vmem:[#allocation7 + $0x38] sm:$0xff]   ;;  %v1358_v23 = vld [vmem:[#allocation8] sm:$0xff]   ;;  %v1052_v30 = vld [vmem:[%s1705_s2] ss:$0 sm:$0xff] }
  0x72   :  { %1139 = vmatpush3.bf16.msra.mxu0 %v1315_v21  ;;  %v1356_v21 = vld [vmem:[#allocation7 + $0x30] sm:$0xff]   ;;  %v1366_v52 = vld [vmem:[#allocation10] sm:$0xff]   ;;  %v1367_v53 = vld [vmem:[#allocation10 + $0x8] sm:$0xff]  }
  0x73   :  { %1140 = vmatprep.subr.bf16.mxu0 %v1318_v27  ;;  %v1362_v27 = vld [vmem:[#allocation8 + $0x20] sm:$0xff]   ;;  %v1369_v55 = vld [vmem:[#allocation10 + $0x18] sm:$0xff]   ;;  %v1110_v4 = vld [vmem:[%s1709_s6] ss:$0 sm:$0xff]  ;;  %s1484_s6 = scalar_lea.vmem %s1042_s10, 128 }
  0x74   :  { %1161 = vmatpush3.bf16.msra.mxu1 %v1317_v26  ;;  %v1361_v26 = vld [vmem:[#allocation8 + $0x18] sm:$0xff]   ;;  %v1119_v12 = vld [vmem:[%s1711_s8] ss:$0 sm:$0xff]  ;;  %p1485_p12 = scmp.ne.s32.totalorder %s1042_s10, %s1484_s6  ;;  %p1490_p0 = scmp.lt.s32.totalorder %s1484_s6, %s1484_s6 }
  0x75   :  { %1162 = vmatprep.subr.bf16.mxu1 %v1320_v29  ;;  %v1373_v3 = vld [vmem:[#allocation10 + $0x38] sm:$0xff]  }
  0x76   :  { %1141 = vmatpush3.bf16.msra.mxu0 %v1319_v28  ;;  %v1363_v28 = vld [vmem:[#allocation8 + $0x28] sm:$0xff]   ;;  %p1491_p1 = por %p1490_p0, %p1489_p13 }
  0x77   :  { %1142 = vmatprep.subr.bf16.mxu0 %v1322_v33 }
  0x78   :  { %1163 = vmatpush3.bf16.msra.mxu1 %v1321_v32  ;;  %p1492_p2 = pnand %p1491_p1, %p1485_p12 }
  0x79   :  { %1164 = vmatprep.subr.bf16.mxu1 %v1324_v35 }
  0x7a   :  { %1143 = vmatpush3.bf16.msra.mxu0 %v1323_v34 }
  0x7b   :  { %1172 = vmatprep.subr.bf16.mxu0 %v1330_v42 }
  0x7c   :  { %1165 = vmatpush3.bf16.msra.mxu1 %v1329_v39 }
  0x7d   :  { %608 = vmatmul.mubr.bf16.vlgmr.msra.gmra.mrb[0].mxu0 %v178_v50  ;;  %1221 = vmatprep.subr.bf16.mxu1 %v1524_v15  ;;  %v1364_v50 = vld [vmem:[#allocation8 + $0x30] sm:$0xff]  }
  0x7e   :  { %1173 = vmatpush3.bf16.msra.mxu0 %v1333_v51  ;;  %687 = vmatprep.mubr.bf16.mxu0 %v183_v8  ;;  %v1365_v51 = vld [vmem:[#allocation8 + $0x38] sm:$0xff]  }
  0x7f   :  { %1174 = vmatprep.subr.bf16.mxu0 %v1334_v54  ;;  %648 = vmatmul.mubr.bf16.vlgmr.msra.gmra.mrb[0].mxu1 %v180_v56  ;;  %v1368_v54 = vld [vmem:[#allocation10 + $0x10] sm:$0xff]   ;;  %v1370_v56 = vld [vmem:[#allocation10 + $0x20] sm:$0xff]  }
  0x80   :  { %1222 = vmatpush3.bf16.msra.mxu1 %v1350_v14  ;;  %1237 = vmatprep.mubr.msk.bf16.mxu1 %vm1525_vm0, %v1524_v15 }
  0x81   :  { %1223 = vmatprep.subr.bf16.mxu1 %v1524_v15 }
  0x82   :  { %1175 = vmatpush3.bf16.msra.mxu0 %v1335_v57  ;;  %v1371_v57 = vld [vmem:[#allocation10 + $0x28] sm:$0xff]  }
  0x83   :  { %1176 = vmatprep.subr.bf16.mxu0 %v1336_v58  ;;  %v1101_v58 = vld [vmem:[%s1707_s4] ss:$0 sm:$0xff] }
  0x84   :  { %1224 = vmatpush3.bf16.msra.mxu1 %v1351_v16 }
  0x85   :  { %1225 = vmatprep.subr.bf16.mxu1 %v1524_v15 }
  0x86   :  { %1177 = vmatpush3.bf16.msra.mxu0 %v1337_v59 }
  0x87   :  { %1178 = vmatprep.subr.bf16.mxu0 %v1338_v60 }
  0x88   :  { %1226 = vmatpush3.bf16.msra.mxu1 %v1352_v17 }
  0x89   :  { %1227 = vmatprep.subr.bf16.mxu1 %v1524_v15 }
  0x8a   :  { %1179 = vmatpush3.bf16.msra.mxu0 %v1339_v61 }
  0x8b   :  { %1180 = vmatprep.subr.bf16.mxu0 %v1340_v62 }
  0x8c   :  { %1228 = vmatpush3.bf16.msra.mxu1 %v1353_v18 }
  0x8d   :  { %1229 = vmatprep.subr.bf16.mxu1 %v1524_v15 }
  0x8e   :  { %1181 = vmatpush3.bf16.msra.mxu0 %v1341_v63 }
  0x8f   :  { %1182 = vmatprep.subr.bf16.mxu0 %v1342_v2  ;;  %v1372_v2 = vld [vmem:[#allocation10 + $0x30] sm:$0xff]  }
  0x90   :  { %1230 = vmatpush3.bf16.msra.mxu1 %v1354_v19 }
  0x91   :  { %1231 = vmatprep.subr.bf16.mxu1 %v1524_v15 }
  0x92   :  { %1183 = vmatpush3.bf16.msra.mxu0 %v1343_v5 }
  0x93   :  { %1184 = vmatprep.subr.bf16.mxu0 %v1344_v7 }
  0x94   :  { %1232 = vmatpush3.bf16.msra.mxu1 %v1355_v20 }
  0x95   :  { %1233 = vmatprep.subr.bf16.mxu1 %v1524_v15 }
  0x96   :  { %1185 = vmatpush3.bf16.msra.mxu0 %v1345_v9 }
  0x97   :  { %1186 = vmatprep.subr.bf16.mxu0 %v1346_v10 }
  0x98   :  { %1234 = vmatpush3.bf16.msra.mxu1 %v1356_v21 }
  0x99   :  { %1235 = vmatprep.subr.bf16.mxu1 %v1524_v15 }
  0x9a   :  { %1187 = vmatpush3.bf16.msra.mxu0 %v1347_v11 }
  0x9b   :  { %1241 = vmatprep.subr.bf16.mxu0 %v1524_v15 }
  0x9c   :  { %1236 = vmatpush3.bf16.msra.mxu1 %v1357_v22 }
  0x9d   :  { %688 = vmatmul.mubr.bf16.vlgmr.msra.gmra.mrb[4].mxu0 %v182_v13  ;;  %1261 = vmatprep.subr.bf16.mxu1 %v1524_v15 }
  0x9e   :  { %1257 = vmatprep.mubr.msk.bf16.mxu0 %vm1525_vm0, %v1524_v15  ;;  %1242 = vmatpush3.bf16.msra.mxu0 %v1358_v23 }
  0x9f   :  { %1243 = vmatprep.subr.bf16.mxu0 %v1524_v15 }
  0xa2   :  { %1244 = vmatpush3.bf16.msra.mxu0 %v1359_v24 }
  0xa3   :  { %1245 = vmatprep.subr.bf16.mxu0 %v1524_v15 }
  0xa6   :  { %1246 = vmatpush3.bf16.msra.mxu0 %v1360_v25 }
  0xa7   :  { %1247 = vmatprep.subr.bf16.mxu0 %v1524_v15 }
  0xaa   :  { %1248 = vmatpush3.bf16.msra.mxu0 %v1361_v26 }
  0xab   :  { %1249 = vmatprep.subr.bf16.mxu0 %v1524_v15 }
  0xae   :  { %1250 = vmatpush3.bf16.msra.mxu0 %v1362_v27 }
  0xaf   :  { %1251 = vmatprep.subr.bf16.mxu0 %v1524_v15 }
  0xb2   :  { %1252 = vmatpush3.bf16.msra.mxu0 %v1363_v28 }
  0xb3   :  { %1253 = vmatprep.subr.bf16.mxu0 %v1524_v15 }
  0xb6   :  { %1254 = vmatpush3.bf16.msra.mxu0 %v1364_v50 }
  0xb7   :  { %1255 = vmatprep.subr.bf16.mxu0 %v1524_v15 }
  0xba   :  { %1256 = vmatpush3.bf16.msra.mxu0 %v1365_v51 }
 0x150   :  { %v1144_v29 = vpop.f32.mrb[0].mxu0 }
 0x151   :  { %v1145_v31 = vpop.f32.mrb[1].mxu0 }
 0x152   :  { %v1146_v32 = vadd.f32 %v1145_v31, %v1144_v29  ;;  %v1147_v33 = vpop.f32.mrb[2].mxu0  ;;  %v1166_v34 = vpop.f32.mrb[0].mxu1 }
 0x153   :  { %v1148_v35 = vpop.f32.mrb[3].mxu0  ;;  %v1167_v37 = vpop.f32.mrb[1].mxu1 }
 0x154   :  { %v610_v36 = vadd.f32 %v1146_v32, %v1052_v30  ;;  %v1168_v38 = vadd.f32 %v1167_v37, %v1166_v34  ;;  %v1169_v39 = vpop.f32.mrb[2].mxu1 }
 0x155   :  { %v1170_v40 = vpop.f32.mrb[3].mxu1 }
 0x156   :  { %v650_v41 = vadd.f32 %v1168_v38, %v610_v36 }
 0x170   :  { %v1188_v42 = vpop.f32.mrb[4].mxu0 }
 0x171   :  { %v1189_v43 = vpop.f32.mrb[5].mxu0 }
 0x172   :  { %v1190_v44 = vadd.f32 %v1189_v43, %v1188_v42  ;;  %v1191_v45 = vpop.f32.mrb[6].mxu0 }
 0x173   :  { %v1192_v46 = vpop.f32.mrb[7].mxu0 }
 0x174   :  { %v690_v47 = vadd.f32 %v1190_v44, %v650_v41 }
 0x176   :  { %v695_v48 = vmax.f32 %v690_v47, 0.0 }
 0x178   :  { %v696_v49 = vpack.c.bf16 %v695_v48, %v695_v48 }
 0x17a   :  { %1238 = vmatmul.mubr.bf16.vlgmr.msra.gmra.mrb[4].mxu1 %v696_v49 }
 0x17b   :  { %1277 = vmatprep.mubr.msk.bf16.mxu1 %vm1525_vm0, %v1524_v15  ;;  %1262 = vmatpush3.bf16.msra.mxu1 %v1366_v52 }
 0x17c   :  { %1263 = vmatprep.subr.bf16.mxu1 %v1524_v15 }
 0x17f   :  { %1264 = vmatpush3.bf16.msra.mxu1 %v1367_v53 }
 0x180   :  { %1265 = vmatprep.subr.bf16.mxu1 %v1524_v15 }
 0x183   :  { %1266 = vmatpush3.bf16.msra.mxu1 %v1368_v54 }
 0x184   :  { %1267 = vmatprep.subr.bf16.mxu1 %v1524_v15 }
 0x187   :  { %1268 = vmatpush3.bf16.msra.mxu1 %v1369_v55 }
 0x188   :  { %1269 = vmatprep.subr.bf16.mxu1 %v1524_v15 }
 0x18b   :  { %1270 = vmatpush3.bf16.msra.mxu1 %v1370_v56 }
 0x18c   :  { %1271 = vmatprep.subr.bf16.mxu1 %v1524_v15 }
 0x18f   :  { %1272 = vmatpush3.bf16.msra.mxu1 %v1371_v57 }
 0x190   :  { %1273 = vmatprep.subr.bf16.mxu1 %v1524_v15 }
 0x193   :  { %1274 = vmatpush3.bf16.msra.mxu1 %v1372_v2 }
 0x194   :  { %1275 = vmatprep.subr.bf16.mxu1 %v1524_v15 }
 0x197   :  { %1276 = vmatpush3.bf16.msra.mxu1 %v1373_v3 }
 0x24d   :  { %v802_v59 = vpop.f32.mrb[4].mxu1 }
 0x24e   :  { %v803_v60 = vadd.f32 %v1101_v58, %v802_v59  ;;  %v1239_v61 = vpop.f32.mrb[5].mxu1 }
 0x24f   :  { %v805_v62 = vpop.f32.mrb[6].mxu1 }
 0x250   :  { %v808_v63 = vmax.f32 %v803_v60, 0.0  ;;  %v1240_v0 = vpop.f32.mrb[7].mxu1 }
 0x252   :  { %v809_v1 = vpack.c.bf16 %v808_v63, %v808_v63 }
 0x254   :  { %1258 = vmatmul.mubr.bf16.vlgmr.msra.gmra.mrb[8].mxu0 %v809_v1 }
 0x327   :  { %v915_v5 = vpop.f32.mrb[8].mxu0 }
 0x328   :  { %v916_v6 = vadd.f32 %v1110_v4, %v915_v5  ;;  %v1259_v7 = vpop.f32.mrb[9].mxu0 }
 0x329   :  { %v918_v8 = vpop.f32.mrb[10].mxu0 }
 0x32a   :  { %v921_v9 = vmax.f32 %v916_v6, 0.0  ;;  %v1260_v10 = vpop.f32.mrb[11].mxu0 }
 0x32c   :  { %v922_v11 = vpack.c.bf16 %v921_v9, %v921_v9 }
 0x32e   :  { %1278 = vmatmul.mubr.bf16.vlgmr.msra.gmra.mrb[8].mxu1 %v922_v11 }
 0x401   :  { %v1028_v13 = vpop.f32.mrb[8].mxu1 }
 0x402   :  { %v1029_v14 = vadd.f32 %v1119_v12, %v1028_v13  ;;  %v1279_v15 = vpop.f32.mrb[9].mxu1 }
 0x403   :  { %v1031_v16 = vpop.f32.mrb[10].mxu1 }
 0x404   :  { %1034 = vst [vmem:[#allocation11] sm:$0xff] %v1029_v14  ;;  %v1280_v17 = vpop.f32.mrb[11].mxu1 }
 0x405   :  { %1495 = shalt.err (!%p1492_p2)
}
 0x406   :  { %s1496_s8 = scalar_lea.hbm %s1712_s9, 128 }
 0x407   :  { %p1497_p3 = scmp.ne.s32.totalorder %s1712_s9, %s1496_s8  ;;  %p1500_p4 = scmp.lt.u32.totalorder %s1496_s8, %s1712_s9 }
 0x409   :  { %p1502_p5 = pnand %p1500_p4, %p1497_p3 }
 0x40b   :  { %1505 = shalt.err (!%p1502_p5)
}
 0x40c   :  { %1044 = dma.vmem_to_hbm [thread:$0]  %s1042_s10, 128, %s1712_s9, [#allocation4]  }
 0x40d   :  { %1512 = dma.done.wait [#allocation4], 128  }
 0x40e   :  { %1513 = vsyncadd [#allocation4], 4294967168 }
 0x40f   :  { %1048 = vsyncpa [#allocation3], 1 }
 0x410   :  { %1049 = vsyncpa [#allocation6], 1 }
 0x411   :  { %1050 = vsyncpa [#allocation9], 1 }
 0x412   :  { %1051 = vsyncpa [#allocation4], 1 }

</bundles_post_ra>
